<compile_context>
chip_gen: v5e
topology: v5e:2x2
jax: 0.10.0
libtpu: 0.0.40
codegen_flags: <defaults>
</compile_context>

<pallas_src>
import numpy as np
import jax
import jax.numpy as jnp
from jax import lax
from jax.experimental import pallas as pl
from jax.experimental.pallas import tpu as pltpu

K_SIZE = 3
STRIDE = 2
_F32 = jnp.float32


def _out_size(n):
    return (n - K_SIZE) // STRIDE + 1


def _pyramid_sizes(h, layer_num):
    sizes = [h]
    for _ in range(layer_num):
        nxt = _out_size(sizes[-1])
        assert nxt >= 1, "spatial size too small for this layer_num"
        sizes.append(nxt)
    return sizes


def _col_selection_matrix(n_in, n_out):
    # A_c^T[w, o] = 1 iff w in [2o, 2o+2]  ->  rows @ A_c^T == lane-direction 3-wide/stride-2 sum.
    a = np.zeros((n_in, n_out), np.float32)
    for o in range(n_out):
        a[STRIDE * o: STRIDE * o + K_SIZE, o] = 1.0
    return a


def _vmem_budget():
    """Generation-aware VMEM numbers: (working-set budget for TB sizing, vmem_limit_bytes)."""
    cap = 64 * 1024 * 1024                       # conservative default (v7x physical VMEM)
    try:
        info = pltpu.get_tpu_info()
        cap = int(getattr(info, "vmem_capacity_bytes", cap)) or cap
    except Exception:
        pass
    work = max(8 * 1024 * 1024, min(cap // 2, 96 * 1024 * 1024))        # v7x ~32MiB, v5e/v6e ~64MiB
    limit = max(32 * 1024 * 1024, min((cap * 3) // 4, 112 * 1024 * 1024))
    return work, limit


def _pick_tb(batch, per_elem_bytes, fixed_bytes, work_budget):
    """Batch elements per grid step: as large as the VMEM budget allows, but keep >= 2
    grid steps whenever batch >= 2 (megacore sharding on v7x)."""
    avail = max(work_budget - fixed_bytes - 2 * 1024 * 1024, per_elem_bytes)
    tb = max(1, avail // max(per_elem_bytes, 1))
    if batch >= 2:
        tb = min(tb, max(1, batch // 2))
    return int(max(1, min(tb, batch)))


def _compiler_params(vmem_limit):
    return pltpu.CompilerParams(
        dimension_semantics=("parallel",),       # batch grid axis -> megacore sharding
        vmem_limit_bytes=int(vmem_limit),
    )


def _row_window_sum(ref, n_out, n_cols):
    """3-row / stride-2 window sum via strided sublane loads + 2 VPU adds (no MXU)."""
    return (ref[:, pl.ds(0, n_out, stride=STRIDE), 0:n_cols]
            + ref[:, pl.ds(1, n_out, stride=STRIDE), 0:n_cols]
            + ref[:, pl.ds(2, n_out, stride=STRIDE), 0:n_cols])


# ----------------------------- edgesumConv.forward ------------------------------
def _edgesum_conv_kernel(act_ref, x_ref, o_ref):
    # act_ref: (W, Wo) constant; x_ref: (TB, H, W); o_ref: (TB, Ho, Wo)
    tb, _, w = x_ref.shape
    ho, wo = o_ref.shape[1], o_ref.shape[2]
    rows = _row_window_sum(x_ref, ho, w)                                # (TB, Ho, W), VPU only
    flat = rows.reshape(tb * ho, w)                                     # batch folded into MXU M
    out = jnp.dot(flat, act_ref[...], preferred_element_type=_F32)     # (TB*Ho, Wo)
    o_ref[...] = out.reshape(tb, ho, wo)


def edgesum_conv(x):
    """Pallas implementation of edgesumConv.forward: x (B,1,H,W) f32 -> (B,1,Ho,Wo)."""
    B, C, H, W = x.shape
    assert C == 1, "edgesumConv is a single-channel 3x3/stride-2 all-ones conv"
    Ho, Wo = _out_size(H), _out_size(W)

    a_ct = jnp.asarray(_col_selection_matrix(W, Wo))                    # (W, Wo), resident
    x3 = x.reshape(B, H, W).astype(_F32)

    work, limit = _vmem_budget()
    # per-batch-element working set: double-buffered in/out tiles + in-kernel intermediates
    per_elem = 4 * (2 * H * W + 2 * Ho * Wo + Ho * W + Ho * Wo)
    fixed = 4 * 2 * W * Wo
    TB = _pick_tb(B, per_elem, fixed, work)
    Bp = ((B + TB - 1) // TB) * TB
    if Bp != B:
        x3 = jnp.pad(x3, ((0, Bp - B), (0, 0), (0, 0)))

    out = pl.pallas_call(
        _edgesum_conv_kernel,
        grid=(Bp // TB,),
        in_specs=[
            pl.BlockSpec((W, Wo), lambda g: (0, 0)),                    # constant, reused each step
            pl.BlockSpec((TB, H, W), lambda g: (g, 0, 0)),              # TB batch elements per step
        ],
        out_specs=pl.BlockSpec((TB, Ho, Wo), lambda g: (g, 0, 0)),
        out_shape=jax.ShapeDtypeStruct((Bp, Ho, Wo), _F32),
        compiler_params=_compiler_params(limit),
    )(a_ct, x3)
    return out[:B].reshape(B, 1, Ho, Wo)


# --------------------- pyramid L1 loss built on edgesumConv ---------------------
def _make_div_kernel(layer_num, sizes, tb):
    L = layer_num
    Lp2 = L + 2

    def kernel(x_ref, y_ref, *rest):
        at = rest[:L]            # A_c^T per level: (s_i, s_{i+1})
        out_ref = rest[L]        # (TB, 1, Lp2)
        dbuf = rest[L + 1]       # VMEM scratch (TB, H, W) f32

        col = lax.broadcasted_iota(jnp.int32, (1, 1, Lp2), 2)
        acc = jnp.zeros((tb, 1, Lp2), _F32)

        def per_batch_sum(a):    # (TB, s, s) -> (TB, 1, 1): lane then sublane reduce
            return jnp.sum(jnp.sum(a, axis=2, keepdims=True), axis=1, keepdims=True)

        # conv(x) - conv(y) == conv(x - y): only the difference goes through the pyramid.
        d0 = x_ref[...] - y_ref[...]
        dbuf[...] = d0

        # level-0 reductions in one traversal of d0 (plain sum + abs sum from same load).
        tot0 = per_batch_sum(d0)
        abs0 = per_batch_sum(jnp.abs(d0))
        acc = acc + (jnp.abs(tot0) * float(L + 1)) * (col == (Lp2 - 1)).astype(_F32)
        acc = acc + (abs0 * (1.0 / float(sizes[0] * sizes[0]))) * (col == 0).astype(_F32)

        for i in range(L):
            si, so = sizes[i], sizes[i + 1]
            rows = _row_window_sum(dbuf, so, si)                        # (TB, so, si), VPU only
            flat = rows.reshape(tb * so, si)                            # batch folded into MXU M
            nxt = jnp.dot(flat, at[i][...], preferred_element_type=_F32)
            nxt = nxt.reshape(tb, so, so)
            acc = acc + (per_batch_sum(jnp.abs(nxt)) * (1.0 / float(so * so))) \
                        * (col == (i + 1)).astype(_F32)
            if i + 1 < L:
                dbuf[:, 0:so, 0:so] = nxt

        out_ref[...] = acc

    return kernel


def cal_div_loss(x, y, alpha, layer_num=2, is_return_tensor=False):
    """Pyramid L1 divergence loss using the edgesumConv pyramid (x, y: (B,1,H,W) f32)."""
    B, C, H, W = x.shape
    assert C == 1 and H == W, "loss path assumes single channel and square maps"
    L = layer_num
    Lp2 = L + 2
    sizes = _pyramid_sizes(H, L)

    AT_np = [_col_selection_matrix(sizes[i], sizes[i + 1]) for i in range(L)]
    AT = [jnp.asarray(a) for a in AT_np]

    x3 = x.reshape(B, H, W).astype(_F32)
    y3 = y.reshape(B, H, W).astype(_F32)

    work, limit = _vmem_budget()
    # x/y double-buffered + dbuf scratch + in-kernel temps (d0, abs, rows)
    per_elem = 4 * (2 * 2 * H * W + H * W + 3 * H * W + 2 * Lp2)
    fixed = 4 * 2 * sum(a.size for a in AT_np)
    TB = _pick_tb(B, per_elem, fixed, work)
    Bp = ((B + TB - 1) // TB) * TB
    if Bp != B:
        pad = ((0, Bp - B), (0, 0), (0, 0))
        x3 = jnp.pad(x3, pad)
        y3 = jnp.pad(y3, pad)

    in_specs = [
        pl.BlockSpec((TB, H, W), lambda g: (g, 0, 0)),
        pl.BlockSpec((TB, H, W), lambda g: (g, 0, 0)),
    ]
    in_specs += [pl.BlockSpec(a.shape, lambda g: (0, 0)) for a in AT]   # constants, resident

    raw = pl.pallas_call(
        _make_div_kernel(L, sizes, TB),
        grid=(Bp // TB,),
        in_specs=in_specs,
        out_specs=pl.BlockSpec((TB, 1, Lp2), lambda g: (g, 0, 0)),
        out_shape=jax.ShapeDtypeStruct((Bp, 1, Lp2), _F32),
        scratch_shapes=[pltpu.VMEM((TB, H, W), _F32)],
        compiler_params=_compiler_params(limit),
    )(x3, y3, *AT)
    raw = raw.reshape(Bp, Lp2)[:B]

    # --- glue: sticky "fuhao" sign carried across the flattened (batch, level) order ---
    # TODO(synk): inherently serial scalar state machine; kept in plain JAX glue.
    k_layer = jnp.trunc(alpha.astype(_F32) / jnp.float32(1.0 / Lp2)).astype(jnp.int32)  # (B,)
    i_idx = jnp.arange(L + 1, dtype=jnp.int32)[None, :]                                 # (1, L+1)
    indicator = (i_idx >= k_layer[:, None])                                             # (B, L+1)
    flipped = jnp.cumsum(indicator.reshape(-1).astype(jnp.int32)) > 0
    sign = jnp.where(flipped, 1.0, -1.0).astype(_F32).reshape(B, L + 1)

    signed = raw[:, : L + 1] * sign
    full = jnp.concatenate([signed, raw[:, L + 1:]], axis=1)
    if is_return_tensor:
        return full
    return full.mean()


# ------------------------------- references -------------------------------------
def _conv_reference(x):
    w = jnp.ones((1, 1, K_SIZE, K_SIZE), _F32)
    return lax.conv_general_dilated(x.astype(_F32), w, (STRIDE, STRIDE), "VALID",
                                    dimension_numbers=("NCHW", "OIHW", "NCHW"))


def _loss_reference(x, y, alpha, layer_num):
    B = x.shape[0]
    L = layer_num
    xm = [np.asarray(x, np.float32)]
    ym = [np.asarray(y, np.float32)]
    for _ in range(L):
        xm.append(np.asarray(_conv_reference(jnp.asarray(xm[-1]))))
        ym.append(np.asarray(_conv_reference(jnp.asarray(ym[-1]))))
    k_layer = np.trunc(np.asarray(alpha, np.float32) / np.float32(1.0 / (L + 2))).astype(np.int64)
    T = np.zeros((B, L + 2), np.float32)
    fuhao = -1.0
    for k in range(B):
        for i in range(L + 1):
            if i >= k_layer[k]:
                fuhao = 1.0
            T[k, i] = np.mean(np.abs(xm[i][k] - ym[i][k])) * fuhao
        T[k, -1] = np.abs(np.sum(xm[0][k]) - np.sum(ym[0][k])) * (L + 1)
    return float(T.mean())


if __name__ == "__main__":
    key = jax.random.PRNGKey(0)
    kx, ky, ka = jax.random.split(key, 3)
    B, C, H, W = 2, 1, 16, 16          # module requires in_channels=1
    layer_num = 2

    x = jax.random.normal(kx, (B, C, H, W), _F32)
    y = jax.random.normal(ky, (B, C, H, W), _F32)
    alpha = jax.random.uniform(ka, (B,), _F32)

    # 1) the module spec: edgesumConv.forward(x)
    out = jax.block_until_ready(edgesum_conv(x))
    ref_out = jax.block_until_ready(_conv_reference(x))
    np.testing.assert_allclose(np.asarray(out), np.asarray(ref_out), rtol=1e-5, atol=1e-5)

    # 2) the loss helper built on the same conv pyramid (fused per-block kernel)
    loss = jax.block_until_ready(cal_div_loss(x, y, alpha, layer_num=layer_num))
    ref_loss = _loss_reference(x, y, alpha, layer_num)
    assert abs(float(loss) - ref_loss) < 1e-3 * max(1.0, abs(ref_loss)), (float(loss), ref_loss)

    print("KERNEL_OK")
</pallas_src>

<mosaic_0001>
module attributes {stable_mosaic.version = 11 : i64} {
  func.func @_edgesum_conv_kernel(%arg0: i32, %arg1: memref<16x7xf32, #tpu.memory_space<vmem>>, %arg2: memref<1x16x16xf32, #tpu.memory_space<vmem>>, %arg3: memref<1x7x7xf32, #tpu.memory_space<vmem>>) attributes {dimension_semantics = [#tpu.dimension_semantics<parallel>], iteration_bounds = array<i64: 2>, scalar_prefetch = 0 : i64, scratch_operands = 0 : i64, tpu.core_type = #tpu.core_type<tc>, window_params = [{pipeline_mode = #tpu.pipeline_mode<synchronous>, transform_indices = @transform_0, window_bounds = array<i64: 16, 7>}, {transform_indices = @transform_1, window_bounds = array<i64: 1, 16, 16>}, {transform_indices = @transform_2, window_bounds = array<i64: 1, 7, 7>}]} {
    %c0 = arith.constant 0 : index
    %c0_0 = arith.constant 0 : index
    %c0_1 = arith.constant 0 : index
    %0 = tpu.strided_load %arg2[%c0, %c0_0, %c0_1] {strides = array<i32: 1, 2, 1>} : memref<1x16x16xf32, #tpu.memory_space<vmem>>, vector<1x7x16xf32>
    %c0_2 = arith.constant 0 : index
    %c1 = arith.constant 1 : index
    %c0_3 = arith.constant 0 : index
    %1 = tpu.strided_load %arg2[%c0_2, %c1, %c0_3] {strides = array<i32: 1, 2, 1>} : memref<1x16x16xf32, #tpu.memory_space<vmem>>, vector<1x7x16xf32>
    %2 = arith.addf %0, %1 : vector<1x7x16xf32>
    %c0_4 = arith.constant 0 : index
    %c2 = arith.constant 2 : index
    %c0_5 = arith.constant 0 : index
    %3 = tpu.strided_load %arg2[%c0_4, %c2, %c0_5] {strides = array<i32: 1, 2, 1>} : memref<1x16x16xf32, #tpu.memory_space<vmem>>, vector<1x7x16xf32>
    %4 = arith.addf %2, %3 : vector<1x7x16xf32>
    %5 = vector.shape_cast %4 : vector<1x7x16xf32> to vector<7x16xf32>
    %c0_6 = arith.constant 0 : index
    %c0_7 = arith.constant 0 : index
    %6 = vector.load %arg1[%c0_6, %c0_7] : memref<16x7xf32, #tpu.memory_space<vmem>>, vector<16x7xf32>
    %cst = arith.constant dense<0.000000e+00> : vector<7x7xf32>
    %7 = tpu.matmul %5, %6, %cst {dimension_numbers = #tpu.dot_dimension_numbers<[1], [0], [0], [1], [0, 0, 1, 1], [], []>} : vector<7x16xf32>, vector<16x7xf32>, vector<7x7xf32> -> vector<7x7xf32>
    %8 = vector.shape_cast %7 : vector<7x7xf32> to vector<1x7x7xf32>
    %c0_8 = arith.constant 0 : index
    %c0_9 = arith.constant 0 : index
    %c0_10 = arith.constant 0 : index
    %9 = vector.load %arg3[%c0_8, %c0_9, %c0_10] : memref<1x7x7xf32, #tpu.memory_space<vmem>>, vector<1x7x7xf32>
    tpu.vector_store %arg3[%c0_8, %c0_9, %c0_10], %8 {strides = array<i32>} : memref<1x7x7xf32, #tpu.memory_space<vmem>>, vector<1x7x7xf32>,
    return
  }
  func.func @transform_0(%arg0: i32) -> (i32, i32) {
    %c0_i32 = arith.constant 0 : i32
    %c0_i32_0 = arith.constant 0 : i32
    %c0_i32_1 = arith.constant 0 : i32
    return %c0_i32, %c0_i32_0 : i32, i32
  }
  func.func @transform_1(%arg0: i32) -> (i32, i32, i32) {
    %c0_i32 = arith.constant 0 : i32
    %c0_i32_0 = arith.constant 0 : i32
    %c0_i32_1 = arith.constant 0 : i32
    return %arg0, %c0_i32, %c0_i32_0 : i32, i32, i32
  }
  func.func @transform_2(%arg0: i32) -> (i32, i32, i32) {
    %c0_i32 = arith.constant 0 : i32
    %c0_i32_0 = arith.constant 0 : i32
    %c0_i32_1 = arith.constant 0 : i32
    return %arg0, %c0_i32, %c0_i32_0 : i32, i32, i32
  }
}

</mosaic_0001>

<bundles_post_ra>
// kernel: tpu_custom_call.1
= control target key start
LH: loop header
LB: loop body
LE: loop exit
PB: predicated region body
PF: predicated region fallthrough
CT: control target
= control target key end

     0   :  { %7 = vsyncpa [#allocation3], 0  ;;  %s501_s0 = inlined_call_operand.vmem [shape: f32[16,7], index: 0, kind: input, shape index: {}]   ;;  %s502_s1 = inlined_call_operand.hbm [shape: f32[2,16,16], index: 1, kind: input, shape index: {}]   ;;  %s503_s2 = inlined_call_operand.vmem [shape: f32[2,7,7], index: 2, kind: output, shape index: {}]  }
   0x1   :  { %9 = vsyncpa [#allocation3 + $0x1], 0  ;;  %s403_s9 = smov 0   ;;  %s405_s10 = smov 0  }
   0x2   :  { %s407_s11 = smov 0   ;;  %s409_s12 = smov 0  }
   0x3 LB: > { %s422_s13 = sadd.s32 4294967295, %s384_s12   ;;  %s425_s14 = sadd.s32 1, %s384_s12   ;;  %s384_s12 = sphi %s409_s12, %s510_s12   ;;  %s380_s11 = sphi %s407_s11, %s509_s11   ;;  %s376_s10 = sphi %s405_s10, %s508_s10   ;;  %s372_s9 = sphi %s403_s9, %s507_s9  }
   0x4   : > { %s40_s15 = ssub.s32 %s384_s12, %s425_s14  ;;  %s43_s16 = sadd.s32 1, %s380_s11 }
   0x5   : > { %p41_p0 = scmp.eq.s32.totalorder %s40_s15, 0  ;;  %p50_p1 = scmp.ne.s32.totalorder %s380_s11, %s376_s10 }
   0x6   : > { %p51_p2 = scmp.eq.s32.totalorder %s384_s12, 0  ;;  %p56_p3 = scmp.ne.s32.totalorder %s376_s10, %s372_s9 }
   0x7   : > { %s435_s17 = scalar_select %p41_p0, %s380_s11, %s43_s16  }
   0x8   : > { %p437_p4 = por %p51_p2, %p50_p1  ;;  %p57_p5 = scmp.eq.s32.totalorder %s422_s13, 0 }
   0x9   : > { %p285_p6 = scmp.lt.s32.totalorder %s384_s12, 2  ;;  %s109_s20 = sand.u32 1, %s380_s11  }
   0xa   : > { %p443_p7 = por %p57_p5, %p56_p3  ;;  %s267_s21 = sshll.u32 %s109_s20, 4 }
   0xb   : > { %s278_s22 = sshll.u32 %s384_s12, 4  ;;  %s113_s26 = scalar_lea.vmem [#allocation2], %s267_s21 }
   0xc   : > { %s118_s25 = scalar_lea.hbm %s502_s1, %s278_s22  ;;  %s121_s27 = sshll.u32 %s113_s26, 4  ;;  %s122_s27 = int_to_ptr.vmem [resolvable:$true] %s121_s27 }
   0xd   : > { %s119_s28 = sshll.u32 %s118_s25, 4  ;;  %p454_p8 = pnand %p285_p6, %p437_p4  ;;  %s120_s28 = int_to_ptr.hbm [resolvable:$true] %s119_s28 }
   0xe   : > { %p270_p9 = scmp.ge.s32.totalorder %s384_s12, 1  ;;  %s110_s30 = scalar_lea.sflag [#allocation3], %s109_s20 }
   0xf   : > { %s320_s3 = sshra.s32 %s120_s28, 4  ;;  %p324_p11 = pneg %p454_p8  ;;  %s321_s3 = int_to_ptr.hbm [resolvable:$true] %s320_s3 }
  0x10   : > { %s322_s4 = scalar_lea.hbm %s321_s3, 16  ;;  %s327_s7 = scalar_lea.hbm %s502_s1, 32 }
  0x11   : > { %p323_p10 = scmp.ne.s32.totalorder %s321_s3, %s322_s4  ;;  %p328_p0 = scmp.lt.s32.totalorder %s321_s3, %s502_s1 }
  0x12   : > { %p329_p1 = scmp.lt.s32.totalorder %s327_s7, %s322_s4 }
  0x13   : > { %p325_p12 = pnand %p324_p11, %p323_p10 }
  0x14   : > { %p330_p2 = por %p329_p1, %p328_p0 }
  0x15   : > { %p326_p13 = pneg %p325_p12 }
  0x17   : > { %p331_p3 = pnand %p330_p2, %p326_p13 }
  0x19   : > { %334 = shalt.err (!%p331_p3)
}
  0x1a   : > { %s386_s15 = smov 128   ;;  %s387_s16 = smov 8  }
  0x1b   : > { %284 = dma.hbm_to_vmem [thread:$0]  (!%p454_p8), %s120_s28, 256, %s122_s27, %s110_s30, %s386_s15, %s386_s15, %s387_s16  }
  0x1c   : > { %p129_p4 = scmp.lt.s32.totalorder %s384_s12, 3 }
  0x1e   : > { %p130_p5 = pnand %p270_p9, %p129_p4 }
  0x1f   : > { %s135_s18 = sand.u32 (!%p130_p5), 1, %s376_s10  }
  0x20   : > { %133 = sbr.rel (%p130_p5) target bundleno = 171 (0xab), region = 28  ;;  %s271_s20 = sshll.u32 (!%p130_p5), %s135_s18, 4 }
  0x21   : > { %s136_s21 = scalar_lea.sflag (!%p130_p5), [#allocation3], %s135_s18  ;;  %s139_s22 = scalar_lea.vmem (!%p130_p5), [#allocation2], %s271_s20 }
  0x25   : > { %367 = dma.done.wait (%p443_p7), %s136_s21, 256  }
  0x26   : > { %369 = vsyncadd (%p443_p7), %s136_s21, 4294967040  ;;  %v172_v0 = vld [vmem:[%s501_s0 + $0x8] sm:$0xff]  ;;  %v171_v1 = vld [vmem:[%s501_s0] sm:$0xff]  ;;  %vm173_vm0 = vcmask 130048   ;;  %p160_p6 = scmp.lt.s32.totalorder %s422_s13, 1  ;;  %vm197_vm1 = vcmask 55296  }
  0x27   : > { %v164_v2 = vld [vmem:[%s139_s22] ss:$2 sm:$0x7f]  ;;  %191 = vmatpush.msra.mxu0 %v172_v0  ;;  %v273_v3 = vld [vmem:[%s139_s22 + $0x1] ss:$2 sm:$0x7f] }
  0x28   : > { %v274_v4 = vld [vmem:[%s139_s22 + $0x2] ss:$2 sm:$0x7f]  ;;  %v167_v5 = vadd.f32 %v273_v3, %v164_v2  ;;  %s512_s13 = smov (!%p160_p6, %s422_s13), 1 }
  0x29   : > { %192 = vmatpush.msra.mxu0 %v171_v1  ;;  %s272_s19 = sshll.u32 %s512_s13, 3 }
  0x2a   : > { %v170_v6 = vadd.f32 %v274_v4, %v167_v5  ;;  %s163_s28 = scalar_lea.vmem %s503_s2, %s272_s19 }
  0x2c   : > { %275 = vmatmul.msk.f32.vlgmr.msra.gmra.mxu0 %vm173_vm0, %v170_v6 }
  0xa9   : > { %v194_v7 = vpop.f32.mrf.mxu0 }
  0xaa   : > { %198 = vst.msk [vmem:[%s163_s28] sm:$0x7f] %vm197_vm1, %v194_v7 }
  0xab PF: > { %p12_p7 = scmp.ge.s32.totalorder %s425_s14, 4   ;;  %s507_s9 = smov %s376_s10 }
  0xac   : > { %s508_s10 = smov %s380_s11  ;;  %s509_s11 = smov %s435_s17 }
  0xad   : > { %s510_s12 = smov %s425_s14  ;;  %14 = sbr.rel (!%p12_p7) target bundleno = 3 (0x3), region = 70 }
  0xb2   :  { %218 = vsyncpa [#allocation3], 1 }
  0xb3   :  { %220 = vsyncpa [#allocation3 + $0x1], 1 }

</bundles_post_ra>
